<compile_context>
chip_gen: v6e
topology: v6e:2x2x1
jax: 0.10.0
libtpu: 0.0.40
codegen_flags: <defaults>
</compile_context>

<pallas_src>
import jax
import jax.numpy as jnp
from jax.experimental import pallas as pl
from jax.experimental.pallas import tpu as pltpu

HIDDEN = 13
LATENT = 5

_LANE = 128
_SUBLANE_BF16 = 16          # bf16 native sublane tile

HP = _LANE                  # padded hidden width (13 -> 128)
LP = _LANE                  # padded latent width (5  -> 128)
MAX_TILE_B = 256            # batch tile for large batches (>=256 per review)


def _round_up(n, m):
    return (n + m - 1) // m * m


# ---------------------------------------------------------------------------
# Parameter init (PyTorch nn.Linear-style), weights stored transposed [in, out]
# ---------------------------------------------------------------------------
def init_params(key, input_dim):
    def linear(k, fan_in, fan_out):
        kw, kb = jax.random.split(k)
        bound = 1.0 / jnp.sqrt(fan_in)
        w = jax.random.uniform(kw, (fan_in, fan_out), jnp.float32, -bound, bound)
        b = jax.random.uniform(kb, (1, fan_out), jnp.float32, -bound, bound)
        return w, b

    k1, k21, k22, k3, k4 = jax.random.split(key, 5)
    return {
        "fc1":  linear(k1,  input_dim, HIDDEN),
        "fc21": linear(k21, HIDDEN,    LATENT),
        "fc22": linear(k22, HIDDEN,    LATENT),
        "fc3":  linear(k3,  LATENT,    HIDDEN),
        "fc4":  linear(k4,  HIDDEN,    input_dim),
    }


# ---------------------------------------------------------------------------
# Static slab layout (all offsets 16-row aligned for bf16 tiling)
#
# Encoder slab, width 2*LP = 256:
#   rows [0      , Dr     )  W1   (D, HP)                cols [0:HP]
#   rows [Dr     , Dr+HP  )  W21||W22 fused (HP, 2*LP)   cols [0:2*LP]
#   rows [r_w3   , +16    )  W3   (LATENT, HP)           cols [0:HP]
#                            b1   (1, HP)                cols [HP:2*HP]  (row r_w3)
#   rows [r_benc , +16    )  b21||b22 (1, 2*LP)          row r_benc
#                            b3   (1, HP)                row r_benc + 1
# Decoder slab, width Dp = round_up(D, 128):
#   rows [0  , HP )          W4   (HIDDEN, D)
#   rows [HP , +16)          b4   (1, D)                 row HP
# ---------------------------------------------------------------------------
def _layout(input_dim):
    dr = _round_up(input_dim, _SUBLANE_BF16)
    r_w1 = 0
    r_wenc = dr
    r_w3 = dr + HP
    r_benc = r_w3 + _SUBLANE_BF16
    e_rows = r_benc + _SUBLANE_BF16
    dp = _round_up(input_dim, _LANE)
    d_rows = HP + _SUBLANE_BF16
    return dict(r_w1=r_w1, r_wenc=r_wenc, r_w3=r_w3, r_benc=r_benc,
                e_rows=e_rows, dp=dp, d_rows=d_rows)


def pack_params(params, input_dim):
    """Pack all weights/biases into two tight bf16 slabs (off the hot path)."""
    L = _layout(input_dim)
    w1, b1 = params["fc1"]
    w21, b21 = params["fc21"]
    w22, b22 = params["fc22"]
    w3, b3 = params["fc3"]
    w4, b4 = params["fc4"]

    enc = jnp.zeros((L["e_rows"], 2 * LP), jnp.float32)
    enc = enc.at[L["r_w1"]:L["r_w1"] + input_dim, 0:HIDDEN].set(w1)
    enc = enc.at[L["r_wenc"]:L["r_wenc"] + HIDDEN, 0:LATENT].set(w21)
    enc = enc.at[L["r_wenc"]:L["r_wenc"] + HIDDEN, LP:LP + LATENT].set(w22)
    enc = enc.at[L["r_w3"]:L["r_w3"] + LATENT, 0:HIDDEN].set(w3)
    enc = enc.at[L["r_w3"]:L["r_w3"] + 1, HP:HP + HIDDEN].set(b1)
    enc = enc.at[L["r_benc"]:L["r_benc"] + 1, 0:LATENT].set(b21)
    enc = enc.at[L["r_benc"]:L["r_benc"] + 1, LP:LP + LATENT].set(b22)
    enc = enc.at[L["r_benc"] + 1:L["r_benc"] + 2, 0:HIDDEN].set(b3)

    dec = jnp.zeros((L["d_rows"], L["dp"]), jnp.float32)
    dec = dec.at[0:HIDDEN, 0:input_dim].set(w4)
    dec = dec.at[HP:HP + 1, 0:input_dim].set(b4)

    return enc.astype(jnp.bfloat16), dec.astype(jnp.bfloat16)


# ---------------------------------------------------------------------------
# Kernel (closed over input_dim so all slab slices are static)
# ---------------------------------------------------------------------------
def _make_kernel(input_dim):
    L = _layout(input_dim)
    D = input_dim
    r_w1, r_wenc, r_w3, r_benc = L["r_w1"], L["r_wenc"], L["r_w3"], L["r_benc"]

    def vae_kernel(x_ref, enc_ref, dec_ref, eps_ref, recon_ref, mu_ref, lv_ref):
        # encode: h1 = relu(x @ W1 + b1)      (bf16 MXU operands, f32 accum)
        x = x_ref[...].astype(jnp.bfloat16)
        w1 = enc_ref[r_w1:r_w1 + D, 0:HP]                         # (D, HP) bf16
        b1 = enc_ref[r_w3:r_w3 + 1, HP:2 * HP].astype(jnp.float32)
        h1 = jnp.maximum(
            jnp.dot(x, w1, preferred_element_type=jnp.float32) + b1, 0.0)

        # fused fc21 || fc22 : one (HP, 2*LP) matmul -> mu | logvar lanes
        w_enc = enc_ref[r_wenc:r_wenc + HP, :]                    # (HP, 2*LP)
        b_enc = enc_ref[r_benc:r_benc + 1, :].astype(jnp.float32)
        mulv = jnp.dot(h1.astype(jnp.bfloat16), w_enc,
                       preferred_element_type=jnp.float32) + b_enc
        mu = mulv[:, 0:LATENT]
        logvar = mulv[:, LP:LP + LATENT]

        # reparameterize (training mode): z = mu + eps * exp(0.5 * logvar)
        z = mu + eps_ref[...] * jnp.exp(0.5 * logvar)

        # decode: h3 = relu(z @ W3 + b3); recon = sigmoid(h3 @ W4 + b4)
        w3 = enc_ref[r_w3:r_w3 + LATENT, 0:HP]                    # (LATENT, HP)
        b3 = enc_ref[r_benc + 1:r_benc + 2, 0:HP].astype(jnp.float32)
        h3 = jnp.maximum(
            jnp.dot(z.astype(jnp.bfloat16), w3,
                    preferred_element_type=jnp.float32) + b3, 0.0)

        w4 = dec_ref[0:HP, :]                                     # (HP, Dp)
        b4 = dec_ref[HP:HP + 1, :].astype(jnp.float32)
        logits = jnp.dot(h3.astype(jnp.bfloat16), w4,
                         preferred_element_type=jnp.float32) + b4

        recon_ref[...] = jax.nn.sigmoid(logits[:, 0:D])
        mu_ref[...] = mu
        lv_ref[...] = logvar

    return vae_kernel


# ---------------------------------------------------------------------------
# Wrapper: no padding / slicing HLOs; batch grid with VMEM-resident slabs.
# ---------------------------------------------------------------------------
@jax.jit
def vae_forward(x, enc_slab, dec_slab, eps):
    """Returns (recon, mu, logvar) matching VAE.forward in training mode."""
    B, D = x.shape

    # Batch tiling: one tile for small B; 256-row pipelined tiles for large B
    # (amortizes the resident weight slabs + launch overhead, and lets v7x's
    # two TensorCores split the batch axis).
    tile_b = B if B <= MAX_TILE_B else MAX_TILE_B
    grid = (pl.cdiv(B, tile_b),)

    def batch_spec(last):
        return pl.BlockSpec((tile_b, last), lambda i: (i, 0))

    def resident_spec(arr):
        return pl.BlockSpec(arr.shape, lambda i: (0, 0))  # DMA once, stays in VMEM

    cp_kwargs = dict(dimension_semantics=("parallel",))
    # Tight packing keeps the weight working set O(D); only raise the scoped
    # VMEM limit if a very large input_dim ever pushes the slabs past default.
    param_vmem = 2 * (enc_slab.size + dec_slab.size)  # bf16 bytes
    if param_vmem > 24 * 1024 * 1024:
        cp_kwargs["vmem_limit_bytes"] = min(2 * param_vmem, 60 * 1024 * 1024)

    flops = 2 * B * (D * HIDDEN + HIDDEN * 2 * LATENT + LATENT * HIDDEN + HIDDEN * D)
    transcendentals = B * (LATENT + D)            # exp for std + sigmoid for recon
    bytes_accessed = (4 * (x.size + eps.size + B * D + 2 * B * LATENT)
                      + 2 * (enc_slab.size + dec_slab.size))

    recon, mu, logvar = pl.pallas_call(
        _make_kernel(D),
        out_shape=(
            jax.ShapeDtypeStruct((B, D), jnp.float32),       # recon
            jax.ShapeDtypeStruct((B, LATENT), jnp.float32),  # mu
            jax.ShapeDtypeStruct((B, LATENT), jnp.float32),  # logvar
        ),
        grid=grid,
        in_specs=[
            batch_spec(D),                 # x
            resident_spec(enc_slab),       # encoder weights/biases (bf16)
            resident_spec(dec_slab),       # decoder weights/bias  (bf16)
            batch_spec(LATENT),            # eps
        ],
        out_specs=(
            batch_spec(D),
            batch_spec(LATENT),
            batch_spec(LATENT),
        ),
        compiler_params=pltpu.CompilerParams(**cp_kwargs),
        cost_estimate=pl.CostEstimate(
            flops=flops,
            transcendentals=transcendentals,
            bytes_accessed=bytes_accessed,
        ),
    )(x, enc_slab, dec_slab, eps)
    return recon, mu, logvar


# ---------------------------------------------------------------------------
# Pure-JAX f32 reference for correctness sanity check
# ---------------------------------------------------------------------------
def vae_forward_ref(x, params, eps):
    (w1, b1) = params["fc1"]
    (w21, b21) = params["fc21"]
    (w22, b22) = params["fc22"]
    (w3, b3) = params["fc3"]
    (w4, b4) = params["fc4"]
    h1 = jnp.maximum(x @ w1 + b1, 0.0)
    mu = h1 @ w21 + b21
    logvar = h1 @ w22 + b22
    z = mu + eps * jnp.exp(0.5 * logvar)
    h3 = jnp.maximum(z @ w3 + b3, 0.0)
    recon = jax.nn.sigmoid(h3 @ w4 + b4)
    return recon, mu, logvar


if __name__ == "__main__":
    key = jax.random.PRNGKey(0)
    k_params, k_x, k_eps = jax.random.split(key, 3)

    batch = 8
    input_dim = 32

    params = init_params(k_params, input_dim)
    enc_slab, dec_slab = pack_params(params, input_dim)   # packed once, off hot path
    x = jax.random.uniform(k_x, (batch, input_dim), jnp.float32)
    # eps drawn in the wrapper (same role as std.data.new(...).normal_() in torch)
    eps = jax.random.normal(k_eps, (batch, LATENT), jnp.float32)

    recon, mu, logvar = vae_forward(x, enc_slab, dec_slab, eps)
    jax.block_until_ready((recon, mu, logvar))

    recon_r, mu_r, logvar_r = vae_forward_ref(x, params, eps)
    # bf16 matmul operands (f32 accumulate) -> loosened tolerance vs f32 reference.
    assert jnp.allclose(recon, recon_r, rtol=3e-2, atol=3e-2), "recon mismatch"
    assert jnp.allclose(mu, mu_r, rtol=3e-2, atol=3e-2), "mu mismatch"
    assert jnp.allclose(logvar, logvar_r, rtol=3e-2, atol=3e-2), "logvar mismatch"

    print("KERNEL_OK")
</pallas_src>

<mosaic_0001>
module attributes {stable_mosaic.version = 11 : i64} {
  func.func @vae_kernel(%arg0: i32, %arg1: memref<8x32xf32, #tpu.memory_space<vmem>>, %arg2: memref<192x256xbf16, #tpu.memory_space<vmem>>, %arg3: memref<144x128xbf16, #tpu.memory_space<vmem>>, %arg4: memref<8x5xf32, #tpu.memory_space<vmem>>, %arg5: memref<8x32xf32, #tpu.memory_space<vmem>>, %arg6: memref<8x5xf32, #tpu.memory_space<vmem>>, %arg7: memref<8x5xf32, #tpu.memory_space<vmem>>) attributes {dimension_semantics = [#tpu.dimension_semantics<parallel>], iteration_bounds = array<i64: 1>, scalar_prefetch = 0 : i64, scratch_operands = 0 : i64, tpu.core_type = #tpu.core_type<tc>, window_params = [{transform_indices = @transform_0, window_bounds = array<i64: 8, 32>}, {pipeline_mode = #tpu.pipeline_mode<synchronous>, transform_indices = @transform_1, window_bounds = array<i64: 192, 256>}, {pipeline_mode = #tpu.pipeline_mode<synchronous>, transform_indices = @transform_2, window_bounds = array<i64: 144, 128>}, {transform_indices = @transform_3, window_bounds = array<i64: 8, 5>}, {transform_indices = @transform_4, window_bounds = array<i64: 8, 32>}, {transform_indices = @transform_5, window_bounds = array<i64: 8, 5>}, {transform_indices = @transform_6, window_bounds = array<i64: 8, 5>}]} {
    %c0 = arith.constant 0 : index
    %c0_0 = arith.constant 0 : index
    %0 = vector.load %arg1[%c0, %c0_0] : memref<8x32xf32, #tpu.memory_space<vmem>>, vector<8x32xf32>
    %1 = arith.truncf %0 : vector<8x32xf32> to vector<8x32xbf16>
    %c0_1 = arith.constant 0 : index
    %c0_2 = arith.constant 0 : index
    %2 = vector.load %arg2[%c0_1, %c0_2] : memref<192x256xbf16, #tpu.memory_space<vmem>>, vector<32x128xbf16>
    %c160 = arith.constant 160 : index
    %c128 = arith.constant 128 : index
    %3 = vector.load %arg2[%c160, %c128] : memref<192x256xbf16, #tpu.memory_space<vmem>>, vector<1x128xbf16>
    %4 = arith.extf %3 : vector<1x128xbf16> to vector<1x128xf32>
    %cst = arith.constant dense<0.000000e+00> : vector<8x128xf32>
    %5 = tpu.matmul %1, %2, %cst {dimension_numbers = #tpu.dot_dimension_numbers<[1], [0], [0], [1], [0, 0, 1, 1], [], []>} : vector<8x32xbf16>, vector<32x128xbf16>, vector<8x128xf32> -> vector<8x128xf32>
    %6 = vector.broadcast %4 : vector<1x128xf32> to vector<8x128xf32>
    %7 = arith.addf %5, %6 : vector<8x128xf32>
    %cst_3 = arith.constant 0.000000e+00 : f32
    %8 = vector.broadcast %cst_3 : f32 to vector<8x128xf32>
    %9 = arith.maximumf %7, %8 : vector<8x128xf32>
    %c32 = arith.constant 32 : index
    %c0_4 = arith.constant 0 : index
    %10 = vector.load %arg2[%c32, %c0_4] : memref<192x256xbf16, #tpu.memory_space<vmem>>, vector<128x256xbf16>
    %c176 = arith.constant 176 : index
    %c0_5 = arith.constant 0 : index
    %11 = vector.load %arg2[%c176, %c0_5] : memref<192x256xbf16, #tpu.memory_space<vmem>>, vector<1x256xbf16>
    %12 = arith.extf %11 : vector<1x256xbf16> to vector<1x256xf32>
    %13 = arith.truncf %9 : vector<8x128xf32> to vector<8x128xbf16>
    %cst_6 = arith.constant dense<0.000000e+00> : vector<8x256xf32>
    %14 = tpu.matmul %13, %10, %cst_6 {dimension_numbers = #tpu.dot_dimension_numbers<[1], [0], [0], [1], [0, 0, 1, 1], [], []>} : vector<8x128xbf16>, vector<128x256xbf16>, vector<8x256xf32> -> vector<8x256xf32>
    %15 = vector.broadcast %12 : vector<1x256xf32> to vector<8x256xf32>
    %16 = arith.addf %14, %15 : vector<8x256xf32>
    %17 = vector.extract_strided_slice %16 {offsets = [0, 0], sizes = [8, 5], strides = [1, 1]} : vector<8x256xf32> to vector<8x5xf32>
    %18 = vector.extract_strided_slice %16 {offsets = [0, 128], sizes = [8, 5], strides = [1, 1]} : vector<8x256xf32> to vector<8x5xf32>
    %c0_7 = arith.constant 0 : index
    %c0_8 = arith.constant 0 : index
    %19 = vector.load %arg4[%c0_7, %c0_8] : memref<8x5xf32, #tpu.memory_space<vmem>>, vector<8x5xf32>
    %cst_9 = arith.constant 5.000000e-01 : f32
    %20 = vector.broadcast %cst_9 : f32 to vector<8x5xf32>
    %21 = arith.mulf %20, %18 : vector<8x5xf32>
    %22 = math.exp %21 : vector<8x5xf32>
    %23 = arith.mulf %19, %22 : vector<8x5xf32>
    %24 = arith.addf %17, %23 : vector<8x5xf32>
    %c160_10 = arith.constant 160 : index
    %c0_11 = arith.constant 0 : index
    %25 = vector.load %arg2[%c160_10, %c0_11] : memref<192x256xbf16, #tpu.memory_space<vmem>>, vector<5x128xbf16>
    %c177 = arith.constant 177 : index
    %c0_12 = arith.constant 0 : index
    %26 = vector.load %arg2[%c177, %c0_12] : memref<192x256xbf16, #tpu.memory_space<vmem>>, vector<1x128xbf16>
    %27 = arith.extf %26 : vector<1x128xbf16> to vector<1x128xf32>
    %28 = arith.truncf %24 : vector<8x5xf32> to vector<8x5xbf16>
    %cst_13 = arith.constant dense<0.000000e+00> : vector<8x128xf32>
    %29 = tpu.matmul %28, %25, %cst_13 {dimension_numbers = #tpu.dot_dimension_numbers<[1], [0], [0], [1], [0, 0, 1, 1], [], []>} : vector<8x5xbf16>, vector<5x128xbf16>, vector<8x128xf32> -> vector<8x128xf32>
    %30 = vector.broadcast %27 : vector<1x128xf32> to vector<8x128xf32>
    %31 = arith.addf %29, %30 : vector<8x128xf32>
    %cst_14 = arith.constant 0.000000e+00 : f32
    %32 = vector.broadcast %cst_14 : f32 to vector<8x128xf32>
    %33 = arith.maximumf %31, %32 : vector<8x128xf32>
    %c0_15 = arith.constant 0 : index
    %c0_16 = arith.constant 0 : index
    %34 = vector.load %arg3[%c0_15, %c0_16] : memref<144x128xbf16, #tpu.memory_space<vmem>>, vector<128x128xbf16>
    %c128_17 = arith.constant 128 : index
    %c0_18 = arith.constant 0 : index
    %35 = vector.load %arg3[%c128_17, %c0_18] : memref<144x128xbf16, #tpu.memory_space<vmem>>, vector<1x128xbf16>
    %36 = arith.extf %35 : vector<1x128xbf16> to vector<1x128xf32>
    %37 = arith.truncf %33 : vector<8x128xf32> to vector<8x128xbf16>
    %cst_19 = arith.constant dense<0.000000e+00> : vector<8x128xf32>
    %38 = tpu.matmul %37, %34, %cst_19 {dimension_numbers = #tpu.dot_dimension_numbers<[1], [0], [0], [1], [0, 0, 1, 1], [], []>} : vector<8x128xbf16>, vector<128x128xbf16>, vector<8x128xf32> -> vector<8x128xf32>
    %39 = vector.broadcast %36 : vector<1x128xf32> to vector<8x128xf32>
    %40 = arith.addf %38, %39 : vector<8x128xf32>
    %41 = vector.extract_strided_slice %40 {offsets = [0, 0], sizes = [8, 32], strides = [1, 1]} : vector<8x128xf32> to vector<8x32xf32>
    %42 = arith.negf %41 : vector<8x32xf32>
    %43 = math.exp %42 : vector<8x32xf32>
    %cst_20 = arith.constant 1.000000e+00 : f32
    %44 = vector.broadcast %cst_20 : f32 to vector<8x32xf32>
    %45 = arith.addf %44, %43 : vector<8x32xf32>
    %46 = arith.divf %44, %45 : vector<8x32xf32>
    %c0_21 = arith.constant 0 : index
    %c0_22 = arith.constant 0 : index
    %47 = vector.load %arg5[%c0_21, %c0_22] : memref<8x32xf32, #tpu.memory_space<vmem>>, vector<8x32xf32>
    tpu.vector_store %arg5[%c0_21, %c0_22], %46 {strides = array<i32>} : memref<8x32xf32, #tpu.memory_space<vmem>>, vector<8x32xf32>,
    %c0_23 = arith.constant 0 : index
    %c0_24 = arith.constant 0 : index
    %48 = vector.load %arg6[%c0_23, %c0_24] : memref<8x5xf32, #tpu.memory_space<vmem>>, vector<8x5xf32>
    tpu.vector_store %arg6[%c0_23, %c0_24], %17 {strides = array<i32>} : memref<8x5xf32, #tpu.memory_space<vmem>>, vector<8x5xf32>,
    %c0_25 = arith.constant 0 : index
    %c0_26 = arith.constant 0 : index
    %49 = vector.load %arg7[%c0_25, %c0_26] : memref<8x5xf32, #tpu.memory_space<vmem>>, vector<8x5xf32>
    tpu.vector_store %arg7[%c0_25, %c0_26], %18 {strides = array<i32>} : memref<8x5xf32, #tpu.memory_space<vmem>>, vector<8x5xf32>,
    return
  }
  func.func @transform_0(%arg0: i32) -> (i32, i32) {
    %c0_i32 = arith.constant 0 : i32
    %c0_i32_0 = arith.constant 0 : i32
    return %arg0, %c0_i32 : i32, i32
  }
  func.func @transform_1(%arg0: i32) -> (i32, i32) {
    %c0_i32 = arith.constant 0 : i32
    %c0_i32_0 = arith.constant 0 : i32
    %c0_i32_1 = arith.constant 0 : i32
    return %c0_i32, %c0_i32_0 : i32, i32
  }
  func.func @transform_2(%arg0: i32) -> (i32, i32) {
    %c0_i32 = arith.constant 0 : i32
    %c0_i32_0 = arith.constant 0 : i32
    %c0_i32_1 = arith.constant 0 : i32
    return %c0_i32, %c0_i32_0 : i32, i32
  }
  func.func @transform_3(%arg0: i32) -> (i32, i32) {
    %c0_i32 = arith.constant 0 : i32
    %c0_i32_0 = arith.constant 0 : i32
    return %arg0, %c0_i32 : i32, i32
  }
  func.func @transform_4(%arg0: i32) -> (i32, i32) {
    %c0_i32 = arith.constant 0 : i32
    %c0_i32_0 = arith.constant 0 : i32
    return %arg0, %c0_i32 : i32, i32
  }
  func.func @transform_5(%arg0: i32) -> (i32, i32) {
    %c0_i32 = arith.constant 0 : i32
    %c0_i32_0 = arith.constant 0 : i32
    return %arg0, %c0_i32 : i32, i32
  }
  func.func @transform_6(%arg0: i32) -> (i32, i32) {
    %c0_i32 = arith.constant 0 : i32
    %c0_i32_0 = arith.constant 0 : i32
    return %arg0, %c0_i32 : i32, i32
  }
}

</mosaic_0001>

<bundles_post_ra>
// kernel: vae_forward.1
= control target key start
LH: loop header
LB: loop body
LE: loop exit
PB: predicated region body
PF: predicated region fallthrough
CT: control target
= control target key end

     0   :  { %12 = vsyncpa [#allocation3], 0  ;;  %s907_s0 = inlined_call_operand.hbm [shape: f32[8,32], index: 0, kind: input, shape index: {}]   ;;  %s908_s1 = inlined_call_operand.hbm [shape: bf16[192,256], index: 1, kind: input, shape index: {}]   ;;  %s909_s2 = inlined_call_operand.hbm [shape: bf16[144,128], index: 2, kind: input, shape index: {}]   ;;  %s910_s3 = inlined_call_operand.hbm [shape: f32[8,5], index: 3, kind: input, shape index: {}]   ;;  %s911_s4 = inlined_call_operand.hbm [shape: f32[8,32], index: 4, kind: output, shape index: {0}]   ;;  %s912_s5 = inlined_call_operand.hbm [shape: f32[8,5], index: 5, kind: output, shape index: {1}]   ;;  %s913_s6 = inlined_call_operand.hbm [shape: f32[8,5], index: 6, kind: output, shape index: {2}]  }
   0x1   :  { %13 = vsyncpa [#allocation6], 0 }
   0x2   :  { %14 = vsyncpa [#allocation9], 0 }
   0x3   :  { %15 = vsyncpa [#allocation4], 0 }
   0x4   :  { %16 = vsyncpa [#allocation12], 0  ;;  %s804_s21 = smov [#allocation5]  }
   0x5   :  { %s32_s22 = sshll.u32 %s804_s21, 4  ;;  %s33_s22 = int_to_ptr.vmem [resolvable:$true] %s32_s22 }
   0x6   :  { %s662_s23 = scalar_lea.vmem %s33_s22, 3072  ;;  %p667_p1 = scmp.lt.s32.totalorder %s33_s22, %s33_s22 }
   0x7   :  { %p663_p0 = scmp.ne.s32.totalorder %s33_s22, %s662_s23  ;;  %p668_p2 = scmp.lt.s32.totalorder %s662_s23, %s662_s23 }
   0x9   :  { %p669_p3 = por %p668_p2, %p667_p1 }
   0xb   :  { %p670_p4 = pnand %p669_p3, %p663_p0 }
   0xd   :  { %673 = shalt.err (!%p670_p4)
}
   0xe   :  { %s805_s24 = smov 128   ;;  %s806_s25 = smov 8  }
   0xf   :  { %38 = dma.hbm_to_vmem [thread:$0]  %s908_s1, 3072, %s33_s22, [#allocation6], %s805_s24, %s805_s24, %s806_s25  }
  0x10   :  { %s807_s28 = smov [#allocation2]   ;;  %s808_s30 = smov [#allocation7]  }
  0x11   :  { %s23_s29 = sshll.u32 %s807_s28, 4  ;;  %s44_s7 = sshll.u32 %s808_s30, 4  ;;  %s24_s29 = int_to_ptr.vmem [resolvable:$true] %s23_s29  ;;  %s45_s7 = int_to_ptr.vmem [resolvable:$true] %s44_s7 }
  0x12   :  { %s682_s8 = scalar_lea.vmem %s24_s29, 128  ;;  %p687_p6 = scmp.lt.s32.totalorder %s24_s29, %s24_s29 }
  0x13   :  { %p683_p5 = scmp.ne.s32.totalorder %s24_s29, %s682_s8  ;;  %p688_p7 = scmp.lt.s32.totalorder %s682_s8, %s682_s8 }
  0x15   :  { %p689_p8 = por %p688_p7, %p687_p6 }
  0x17   :  { %p690_p9 = pnand %p689_p8, %p683_p5 }
  0x19   :  { %693 = shalt.err (!%p690_p9)
}
  0x1a   :  { %26 = dma.hbm_to_vmem [thread:$0]  %s907_s0, 128, %s24_s29, [#allocation3]  }
  0x1b   :  { %s702_s11 = scalar_lea.vmem %s45_s7, 1152  ;;  %p707_p11 = scmp.lt.s32.totalorder %s45_s7, %s45_s7 }
  0x1c   :  { %p703_p10 = scmp.ne.s32.totalorder %s45_s7, %s702_s11  ;;  %p708_p12 = scmp.lt.s32.totalorder %s702_s11, %s702_s11 }
  0x1e   :  { %p709_p13 = por %p708_p12, %p707_p11 }
  0x20   :  { %p710_p0 = pnand %p709_p13, %p703_p10 }
  0x22   :  { %713 = shalt.err (!%p710_p0)
}
  0x23   :  { %s809_s1 = smov 64   ;;  %s810_s12 = smov 4  }
  0x24   :  { %50 = dma.hbm_to_vmem [thread:$0]  %s909_s2, 1152, %s45_s7, [#allocation6], %s809_s1, %s809_s1, %s810_s12  }
  0x25   :  { %s811_s15 = smov [#allocation8]  }
  0x26   :  { %s57_s16 = sshll.u32 %s811_s15, 4  ;;  %s58_s16 = int_to_ptr.vmem [resolvable:$true] %s57_s16 }
  0x27   :  { %s722_s17 = scalar_lea.vmem %s58_s16, 128  ;;  %p727_p2 = scmp.lt.s32.totalorder %s58_s16, %s58_s16 }
  0x28   :  { %p723_p1 = scmp.ne.s32.totalorder %s58_s16, %s722_s17  ;;  %p728_p3 = scmp.lt.s32.totalorder %s722_s17, %s722_s17 }
  0x2a   :  { %p729_p4 = por %p728_p3, %p727_p2 }
  0x2c   :  { %p730_p5 = pnand %p729_p4, %p723_p1 }
  0x2e   :  { %733 = shalt.err (!%p730_p5)
}
  0x2f   :  { %60 = dma.hbm_to_vmem [thread:$0]  %s910_s3, 128, %s58_s16, [#allocation9]  }
  0x30   :  { %794 = dma.done.wait [#allocation3], 128  }
  0x31   :  { %795 = vsyncadd [#allocation3], 4294967168 }
  0x32   :  { %796 = dma.done.wait [#allocation6], 4224  }
  0x33   :  { %797 = vsyncadd [#allocation6], 4294963072 }
  0x34   :  { %798 = dma.done.wait [#allocation9], 128  }
  0x35   :  { %799 = vsyncadd [#allocation9], 4294967168  ;;  %v812_v0 = vmov 0.0   ;;  %vm813_vm0 = vmmov 0   ;;  %v614_v1 = vld [vmem:[#allocation5 + $0x10] ss:$8 sps:$4 sm:$0xff]   ;;  %v82_v22 = vlaneseq }
  0x36   :  { %565 = vmatprep.subr.bf16.mxu1 %v812_v0  ;;  %569 = vmatprep.mubr.msk.bf16.mxu1 %vm813_vm0, %v812_v0  ;;  %v615_v2 = vld [vmem:[#allocation5] ss:$8 sps:$4 sm:$0xff]   ;;  %v74_v3 = vld [vmem:[#allocation2] sm:$0xff]  ;;  %vm98_vm1 = vcmask 261120   ;;  %v621_v7 = vld [vmem:[#allocation5 + $0x84] ss:$8 sps:$4 sm:$0xff]  }
  0x37   :  { %573 = vmatprep.subr.bf16.mxu0 %v812_v0  ;;  %575 = vmatprep.mubr.msk.bf16.mxu0 %vm813_vm0, %v812_v0  ;;  %v618_v4 = vld [vmem:[#allocation5 + $0x94] ss:$8 sps:$4 sm:$0xff]   ;;  %v75_v5 = vpack.c.bf16 %v74_v3, %v74_v3  ;;  %v616_v6 = vld [vmem:[#allocation5 + $0x90] ss:$8 sps:$4 sm:$0xff]   ;;  %v619_v8 = vld [vmem:[#allocation5 + $0x80] ss:$8 sps:$4 sm:$0xff]  }
  0x38   :  { %566 = vmatpush3.bf16.msra.mxu1 %v614_v1  ;;  %v624_v9 = vld [vmem:[#allocation5 + $0x74] ss:$8 sps:$4 sm:$0xff]   ;;  %v622_v10 = vld [vmem:[#allocation5 + $0x70] ss:$8 sps:$4 sm:$0xff]   ;;  %v627_v11 = vld [vmem:[#allocation5 + $0x64] ss:$8 sps:$4 sm:$0xff]  }
  0x39   :  { %567 = vmatprep.subr.bf16.mxu1 %v812_v0  ;;  %v625_v12 = vld [vmem:[#allocation5 + $0x60] ss:$8 sps:$4 sm:$0xff]   ;;  %v630_v13 = vld [vmem:[#allocation5 + $0x54] ss:$8 sps:$4 sm:$0xff]   ;;  %v628_v14 = vld [vmem:[#allocation5 + $0x50] ss:$8 sps:$4 sm:$0xff]  }
  0x3a   :  { %v633_v15 = vld [vmem:[#allocation5 + $0x44] ss:$8 sps:$4 sm:$0xff]   ;;  %v631_v16 = vld [vmem:[#allocation5 + $0x40] ss:$8 sps:$4 sm:$0xff]   ;;  %v636_v17 = vld [vmem:[#allocation5 + $0x34] ss:$8 sps:$4 sm:$0xff]  }
  0x3b   :  { %v634_v18 = vld [vmem:[#allocation5 + $0x30] ss:$8 sps:$4 sm:$0xff]   ;;  %v639_v19 = vld [vmem:[#allocation5 + $0x24] ss:$8 sps:$4 sm:$0xff]   ;;  %v637_v20 = vld [vmem:[#allocation5 + $0x20] ss:$8 sps:$4 sm:$0xff]  }
  0x3c   :  { %568 = vmatpush3.bf16.msra.mxu1 %v615_v2  ;;  %v814_v21 = vmov 0   ;;  %v874_v23 = vshrl.u32 %v82_v22, 7  ;;  %v80_v24 = vld [vmem:[#allocation5 + $0xa4] sm:$0x1]  ;;  %v298_v35 = vld [vmem:[#allocation5 + $0xa0] sm:$0x7] }
  0x3d   :  { %251 = vmatprep.subr.bf16.mxu1 %v618_v4  ;;  %v81_v25 = vunpack.c.l.bf16 %v80_v24  ;;  %vm310_vm2 = vcmask 1041408   ;;  %vm311_vm3 = vcmask 1042432   ;;  %v815_v36 = vmov 65535   ;;  %v159_v40 = vld [vmem:[#allocation5 + $0xb0] sm:$0x11]  ;;  %v292_v53 = vld [vmem:[#allocation8] sm:$0xff] }
  0x3e   :  { %v877_v26 = vsub.s32 0, %v874_v23  ;;  %v312_v37 = vsel %vm310_vm2, 4294967295, %v815_v36  ;;  %v160_v41 = vunpack.c.l.bf16 %v159_v40  ;;  %v161_v42 = vunpack.c.h.bf16 %v159_v40  ;;  %v640_v57 = vld [vmem:[#allocation7 + $0x38] sm:$0xff]   ;;  %v641_v59 = vld [vmem:[#allocation7 + $0x30] sm:$0xff]   ;;  %v642_v60 = vld [vmem:[#allocation7 + $0x28] sm:$0xff]   ;;  %s816_s2 = smov [#allocation11]  }
  0x3f   :  { %570 = vmatmul.mubr.msk.bf16.vlgmr.msra.gmra.mxu1 %vm98_vm1, %v75_v5  ;;  %v313_v38 = vsel %vm311_vm3, %v312_v37, 0  ;;  %vm306_vm4 = vcmask 39936   ;;  %v643_v61 = vld [vmem:[#allocation7 + $0x20] sm:$0xff]   ;;  %v644_v62 = vld [vmem:[#allocation7 + $0x18] sm:$0xff]   ;;  %v645_v63 = vld [vmem:[#allocation7 + $0x10] sm:$0xff]   ;;  %v304_v5 = vsub.s32 1, %v874_v23 }
  0x40   :  { %252 = vmatpush1.bf16.msra.mxu1 %v616_v6  ;;  %283 = vmatprep.mubr.bf16.mxu1 %v814_v21  ;;  %v85_v27 = vrot.slane %v81_v25, %v877_v26  ;;  %v315_v39 = vand.u32 %v313_v38, %v298_v35  ;;  %v166_v43 = vrot.slane %v160_v41, %v877_v26  ;;  %v646_v1 = vld [vmem:[#allocation7 + $0x8] sm:$0xff]   ;;  %v647_v2 = vld [vmem:[#allocation7] sm:$0xff]   ;;  %v299_v3 = vld [vmem:[#allocation5 + $0xb0] sm:$0x1]  ;;  %s494_s3 = sshll.u32 %s816_s2, 4  ;;  %s495_s3 = int_to_ptr.vmem [resolvable:$true] %s494_s3 }
  0x41   :  { %253 = vmatprep.subr.bf16.mxu1 %v621_v7  ;;  %v170_v44 = vrot.slane %v161_v42, %v877_v26  ;;  %v300_v4 = vunpack.c.l.bf16 %v299_v3  ;;  %s734_s19 = scalar_lea.vmem %s495_s3, 128  ;;  %p739_p7 = scmp.lt.s32.totalorder %s495_s3, %s495_s3 }
  0x42   :  { %574 = vmatpush3.bf16.msra.mxu0 %v315_v39  ;;  %p735_p6 = scmp.ne.s32.totalorder %s495_s3, %s734_s19  ;;  %p740_p8 = scmp.lt.s32.totalorder %s734_s19, %s734_s19 }
  0x43   :  { %579 = vmatprep.subr.bf16.mxu0 %v812_v0  ;;  %v305_v6 = vrot.slane %v300_v4, %v304_v5 }
  0x44   :  { %254 = vmatpush1.bf16.msra.mxu1 %v619_v8  ;;  %p741_p9 = por %p740_p8, %p739_p7 }
  0x45   :  { %255 = vmatprep.subr.bf16.mxu1 %v624_v9 }
  0x46   :  { %p742_p10 = pnand %p741_p9, %p735_p6 }
  0x48   :  { %256 = vmatpush1.bf16.msra.mxu1 %v622_v10 }
  0x49   :  { %257 = vmatprep.subr.bf16.mxu1 %v627_v11 }
  0x4c   :  { %258 = vmatpush1.bf16.msra.mxu1 %v625_v12 }
  0x4d   :  { %259 = vmatprep.subr.bf16.mxu1 %v630_v13 }
  0x50   :  { %260 = vmatpush1.bf16.msra.mxu1 %v628_v14 }
  0x51   :  { %261 = vmatprep.subr.bf16.mxu1 %v633_v15 }
  0x54   :  { %262 = vmatpush1.bf16.msra.mxu1 %v631_v16 }
  0x55   :  { %263 = vmatprep.subr.bf16.mxu1 %v636_v17 }
  0x58   :  { %264 = vmatpush1.bf16.msra.mxu1 %v634_v18 }
  0x59   :  { %265 = vmatprep.subr.bf16.mxu1 %v639_v19 }
  0x5c   :  { %266 = vmatpush1.bf16.msra.mxu1 %v637_v20 }
  0xff   :  { %v136_v28 = vpop.f32.mrf.mxu1 }
 0x100   :  { %v137_v29 = vadd.f32 %v136_v28, %v85_v27 }
 0x101   :  { %v571_v30 = vpop.f32.mrf.mxu1 }
 0x102   :  { %v142_v31 = vmax.f32 %v137_v29, 0.0 }
 0x103   :  { %v139_v32 = vpop.f32.mrf.mxu1 }
 0x104   :  { %v162_v33 = vpack.c.bf16 %v142_v31, %v142_v31 }
 0x105   :  { %v572_v34 = vpop.f32.mrf.mxu1 }
 0x106   :  { %284 = vmatmul.mubr.bf16.vlgmr.msra.gmra.mxu1 %v162_v33 }
 0x1c6   :  { %v285_v45 = vpop.f32.mrf.mxu1 }
 0x1c7   :  { %v286_v46 = vadd.f32 %v285_v45, %v166_v43 }
 0x1c8   :  { %v287_v47 = vpop.f32.mrf.mxu1 }
 0x1c9   :  { %v288_v48 = vadd.f32 %v287_v47, %v170_v44  ;;  %476 = vst.msk [vmem:[#allocation11] sm:$0xff] %vm306_vm4, %v286_v46 }
 0x1ca   :  { %v289_v49 = vpop.f32.mrf.mxu1 }
 0x1cb   :  { %v293_v50 = vmul.f32 0.5, %v288_v48  ;;  %477 = vst.msk [vmem:[#allocation13] sm:$0xff] %vm306_vm4, %v288_v48 }
 0x1cc   :  { %v290_v51 = vpop.f32.mrf.mxu1 }
 0x1cd   :  { %v294_v52 = vmul.f32 1.442695, %v293_v50 }
 0x1cf   :  { %648 = vpow2.f32 %v294_v52 }
 0x1dc   :  { %v649_v54 = vpop.eup %648 }
 0x1dd   :  { %v296_v55 = vmul.f32 %v649_v54, %v292_v53 }
 0x1df   :  { %v297_v56 = vadd.f32 %v296_v55, %v286_v46 }
 0x1e1   :  { %v301_v58 = vpack.c.bf16 %v297_v56, %v297_v56 }
 0x1e3   :  { %576 = vmatmul.mubr.msk.bf16.vlgmr.msra.gmra.mxu0 %vm306_vm4, %v301_v58 }
 0x1e4   :  { %580 = vmatpush3.bf16.msra.mxu0 %v640_v57  ;;  %595 = vmatprep.mubr.msk.bf16.mxu0 %vm813_vm0, %v812_v0 }
 0x1e5   :  { %581 = vmatprep.subr.bf16.mxu0 %v812_v0 }
 0x1e8   :  { %582 = vmatpush3.bf16.msra.mxu0 %v641_v59 }
 0x1e9   :  { %583 = vmatprep.subr.bf16.mxu0 %v812_v0 }
 0x1ec   :  { %584 = vmatpush3.bf16.msra.mxu0 %v642_v60 }
 0x1ed   :  { %585 = vmatprep.subr.bf16.mxu0 %v812_v0 }
 0x1f0   :  { %586 = vmatpush3.bf16.msra.mxu0 %v643_v61 }
 0x1f1   :  { %587 = vmatprep.subr.bf16.mxu0 %v812_v0 }
 0x1f4   :  { %588 = vmatpush3.bf16.msra.mxu0 %v644_v62 }
 0x1f5   :  { %589 = vmatprep.subr.bf16.mxu0 %v812_v0 }
 0x1f8   :  { %590 = vmatpush3.bf16.msra.mxu0 %v645_v63 }
 0x1f9   :  { %591 = vmatprep.subr.bf16.mxu0 %v812_v0 }
 0x1fc   :  { %592 = vmatpush3.bf16.msra.mxu0 %v646_v1 }
 0x1fd   :  { %593 = vmatprep.subr.bf16.mxu0 %v812_v0 }
 0x200   :  { %594 = vmatpush3.bf16.msra.mxu0 %v647_v2 }
 0x2a3   :  { %v351_v7 = vpop.f32.mrf.mxu0 }
 0x2a4   :  { %v352_v8 = vadd.f32 %v351_v7, %v305_v6 }
 0x2a5   :  { %v577_v9 = vpop.f32.mrf.mxu0 }
 0x2a6   :  { %v357_v10 = vmax.f32 %v352_v8, 0.0 }
 0x2a7   :  { %v354_v11 = vpop.f32.mrf.mxu0 }
 0x2a8   :  { %v376_v12 = vpack.c.bf16 %v357_v10, %v357_v10 }
 0x2a9   :  { %v578_v13 = vpop.f32.mrf.mxu0 }
 0x2aa   :  { %596 = vmatmul.mubr.bf16.vlgmr.msra.gmra.mxu0 %v376_v12 }
 0x2ab   :  { %745 = shalt.err (!%p742_p10)
}
 0x2ac   :  { %497 = dma.vmem_to_hbm [thread:$0]  %s495_s3, 128, %s912_s5, [#allocation12]  }
 0x2ad   :  { %s817_s22 = smov [#allocation13]  }
 0x2ae   :  { %s504_s23 = sshll.u32 %s817_s22, 4  ;;  %s505_s23 = int_to_ptr.vmem [resolvable:$true] %s504_s23 }
 0x2af   :  { %s754_s24 = scalar_lea.vmem %s505_s23, 128  ;;  %p759_p12 = scmp.lt.s32.totalorder %s505_s23, %s505_s23 }
 0x2b0   :  { %p755_p11 = scmp.ne.s32.totalorder %s505_s23, %s754_s24  ;;  %p760_p13 = scmp.lt.s32.totalorder %s754_s24, %s754_s24 }
 0x2b2   :  { %p761_p0 = por %p760_p13, %p759_p12 }
 0x2b4   :  { %p762_p1 = pnand %p761_p0, %p755_p11 }
 0x2b6   :  { %765 = shalt.err (!%p762_p1)
}
 0x2b7   :  { %507 = dma.vmem_to_hbm [thread:$0]  %s505_s23, 128, %s913_s6, [#allocation12]   ;;  %v374_v0 = vld [vmem:[#allocation7 + $0x40] sm:$0x1] }
 0x2b8   :  { %v375_v14 = vunpack.c.l.bf16 %v374_v0  ;;  %s818_s5 = smov [#allocation10]  }
 0x2b9   :  { %s484_s27 = sshll.u32 %s818_s5, 4  ;;  %s485_s27 = int_to_ptr.vmem [resolvable:$true] %s484_s27 }
 0x2ba   :  { %v380_v15 = vrot.slane %v375_v14, %v877_v26  ;;  %s774_s6 = scalar_lea.vmem %s485_s27, 128  ;;  %p779_p3 = scmp.lt.s32.totalorder %s485_s27, %s485_s27 }
 0x2bb   :  { %p775_p2 = scmp.ne.s32.totalorder %s485_s27, %s774_s6  ;;  %p780_p4 = scmp.lt.s32.totalorder %s774_s6, %s774_s6 }
 0x2bd   :  { %p781_p5 = por %p780_p4, %p779_p3 }
 0x2bf   :  { %p782_p6 = pnand %p781_p5, %p775_p2 }
 0x36a   :  { %v463_v16 = vpop.f32.mrf.mxu0 }
 0x36b   :  { %v464_v17 = vadd.f32 %v463_v16, %v380_v15 }
 0x36c   :  { %v597_v18 = vpop.f32.mrf.mxu0 }
 0x36d   :  { %v550_v19 = vmul.f32 -1.442695, %v464_v17 }
 0x36e   :  { %v466_v20 = vpop.f32.mrf.mxu0 }
 0x36f   :  { %650 = vpow2.f32 %v550_v19 }
 0x370   :  { %v598_v21 = vpop.f32.mrf.mxu0 }
 0x37c   :  { %v651_v22 = vpop.eup %650 }
 0x37d   :  { %v472_v23 = vadd.f32 1.0, %v651_v22 }
 0x37f   :  { %652 = vrcp.f32 %v472_v23 }
 0x38c   :  { %v653_v24 = vpop.eup %652 }
 0x38d   :  { %475 = vst.msk [vmem:[#allocation10] sm:$0xff] %vm98_vm1, %v653_v24 }
 0x38e   :  { %785 = shalt.err (!%p782_p6)
}
 0x38f   :  { %487 = dma.vmem_to_hbm [thread:$0]  %s485_s27, 128, %s911_s4, [#allocation4]  }
 0x390   :  { %800 = dma.done.wait [#allocation4], 128  }
 0x391   :  { %801 = vsyncadd [#allocation4], 4294967168 }
 0x392   :  { %802 = dma.done.wait [#allocation12], 256  }
 0x393   :  { %803 = vsyncadd [#allocation12], 4294967040 }
 0x394   :  { %517 = vsyncpa [#allocation3], 1 }
 0x395   :  { %518 = vsyncpa [#allocation6], 1 }
 0x396   :  { %519 = vsyncpa [#allocation9], 1 }
 0x397   :  { %520 = vsyncpa [#allocation4], 1 }
 0x398   :  { %521 = vsyncpa [#allocation12], 1 }

</bundles_post_ra>
